<compile_context>
chip_gen: v6e
topology: v6e:2x2x1
jax: 0.10.0
libtpu: 0.0.40
codegen_flags: <defaults>
</compile_context>

<pallas_src>
import functools

import jax
import jax.numpy as jnp
from jax.experimental import pallas as pl
from jax.experimental.pallas import tpu as pltpu


def _round_up(x, m):
    return (x + m - 1) // m * m


# --------------- Pass 1: streaming global-average-pool (spatial sums) ---------------
def _pool_kernel(x_ref, sum_ref):
    # x_ref: (1, C, T); sum_ref: (1, C, 1) f32, resident across the spatial grid axis.
    @pl.when(pl.program_id(1) == 0)
    def _():
        sum_ref[...] = jnp.zeros_like(sum_ref)

    x = x_ref[0]                                         # (C, T)
    # Spatial sum as an MXU mat-vec (f32 accumulation); zero padding adds nothing.
    ones = jnp.ones((x.shape[-1], 1), dtype=x.dtype)
    sum_ref[0] += jnp.dot(x, ones, preferred_element_type=jnp.float32)   # (C, 1)


# --------------- Pass 2: squeeze-excite FCs, batched across N -----------------------
def _gate_kernel(sum_ref, w1_ref, w2_ref, a_ref, *, inv_hw):
    y = sum_ref[...] * inv_hw                                            # (N, C) mean
    h = jnp.dot(y, w1_ref[...], preferred_element_type=jnp.float32)      # (N, Cr)
    h = jnp.maximum(h, 0.0)
    a = jnp.dot(h, w2_ref[...], preferred_element_type=jnp.float32)      # (N, C)
    a_ref[...] = jax.nn.sigmoid(a)


# --------------- Pass 3: streaming channel-wise scale -------------------------------
def _scale_kernel(x_ref, a_ref, o_ref):
    # Keep the dominant elementwise op in x's dtype (bf16 VALU path on v6e/v7x);
    # for f32 inputs this is the plain f32 path.
    o_ref[...] = x_ref[...] * a_ref[...].astype(x_ref.dtype)


def ca_layer(x, w1, w2, *, lane_tile=2048):
    """CALayer forward.

    x : (N, C, H, W) NCHW
    w1: (Cr, C, 1, 1)  -- nn.Conv2d(channel, channel//reduction, 1, bias=False).weight
    w2: (C, Cr, 1, 1)  -- nn.Conv2d(channel//reduction, channel, 1, bias=False).weight
    """
    N, C, H, W = x.shape
    Cr = w1.shape[0]
    HW = H * W
    itemsize = jnp.dtype(x.dtype).itemsize

    # Lane-dense spatial tile: a multiple of 128, capped at `lane_tile` lanes.
    T = min(lane_tile, _round_up(HW, 128))
    HW_pad = _round_up(HW, T)
    n_sp = HW_pad // T

    x_flat = x.reshape(N, C, HW)
    if HW_pad != HW:
        x_flat = jnp.pad(x_flat, ((0, 0), (0, 0), (0, HW_pad - HW)))

    # conv weight (Co, Ci, 1, 1) -> row-major matmul weights
    w1_mat = w1.reshape(Cr, C).T.astype(jnp.float32)   # (C, Cr)
    w2_mat = w2.reshape(C, Cr).T.astype(jnp.float32)   # (Cr, C)

    # ---- Pass 1: per-(image, channel) spatial sums, streamed in T-lane tiles ----
    sums = pl.pallas_call(
        _pool_kernel,
        out_shape=jax.ShapeDtypeStruct((N, C, 1), jnp.float32),
        grid_spec=pltpu.PrefetchScalarGridSpec(
            num_scalar_prefetch=0,
            grid=(N, n_sp),                      # reduction axis last
            in_specs=[pl.BlockSpec((1, C, T), lambda n, s: (n, 0, s))],
            out_specs=pl.BlockSpec((1, C, 1), lambda n, s: (n, 0, 0)),
        ),
        compiler_params=pltpu.CompilerParams(
            dimension_semantics=("parallel", "arbitrary")),
        cost_estimate=pl.CostEstimate(
            flops=2 * N * C * HW_pad,
            transcendentals=0,
            bytes_accessed=N * C * HW_pad * itemsize + N * C * 4),
    )(x_flat)

    # ---- Pass 2: tiny batched squeeze-excite MLP -> (N, C) gate ----
    gate = pl.pallas_call(
        functools.partial(_gate_kernel, inv_hw=1.0 / HW),
        out_shape=jax.ShapeDtypeStruct((N, C), jnp.float32),
    )(sums.reshape(N, C), w1_mat, w2_mat)

    # ---- Pass 3: stream x again, scale by the per-channel gate ----
    out_flat = pl.pallas_call(
        _scale_kernel,
        out_shape=jax.ShapeDtypeStruct((N, C, HW_pad), x.dtype),
        grid_spec=pltpu.PrefetchScalarGridSpec(
            num_scalar_prefetch=0,
            grid=(N, n_sp),
            in_specs=[
                pl.BlockSpec((1, C, T), lambda n, s: (n, 0, s)),
                pl.BlockSpec((1, C, 1), lambda n, s: (n, 0, 0)),
            ],
            out_specs=pl.BlockSpec((1, C, T), lambda n, s: (n, 0, s)),
        ),
        compiler_params=pltpu.CompilerParams(
            dimension_semantics=("parallel", "parallel")),
        cost_estimate=pl.CostEstimate(
            flops=N * C * HW_pad,
            transcendentals=0,
            bytes_accessed=2 * N * C * HW_pad * itemsize + N * C * 4),
    )(x_flat, gate.reshape(N, C, 1))

    if HW_pad != HW:
        out_flat = out_flat[..., :HW]
    return out_flat.reshape(N, C, H, W)


def ca_layer_ref(x, w1, w2):
    """Pure-JAX reference matching the PyTorch forward."""
    N, C, H, W = x.shape
    Cr = w1.shape[0]
    y = jnp.mean(x.astype(jnp.float32), axis=(2, 3))                 # (N, C)
    h = jnp.maximum(y @ w1.reshape(Cr, C).T.astype(jnp.float32), 0.)  # (N, Cr)
    a = jax.nn.sigmoid(h @ w2.reshape(C, Cr).T.astype(jnp.float32))   # (N, C)
    return x * a[:, :, None, None].astype(x.dtype)


if __name__ == "__main__":
    channel, reduction = 64, 16
    Cr = channel // reduction

    key = jax.random.PRNGKey(0)
    kx1, kx2, k1, k2 = jax.random.split(key, 4)

    # deterministic synthetic conv weights (shapes match nn.Conv2d(..., 1, bias=False))
    w1 = jax.random.normal(k1, (Cr, channel, 1, 1), dtype=jnp.float32) * (1.0 / channel ** 0.5)
    w2 = jax.random.normal(k2, (channel, Cr, 1, 1), dtype=jnp.float32) * (1.0 / Cr ** 0.5)

    # Case 1: small spatial extent (HW=64 -> padded to one lane-dense 128-wide tile).
    x1 = jax.random.normal(kx1, (2, channel, 8, 8), dtype=jnp.float32)
    out1 = jax.block_until_ready(ca_layer(x1, w1, w2))
    ref1 = ca_layer_ref(x1, w1, w2)
    assert out1.shape == x1.shape
    assert jnp.allclose(out1, ref1, atol=1e-5, rtol=1e-5), "case 1 mismatch vs reference"

    # Case 2: larger spatial extent (HW=1600 -> 4 streamed 512-lane tiles + padding).
    x2 = jax.random.normal(kx2, (2, channel, 40, 40), dtype=jnp.float32)
    out2 = jax.block_until_ready(ca_layer(x2, w1, w2, lane_tile=512))
    ref2 = ca_layer_ref(x2, w1, w2)
    assert out2.shape == x2.shape
    assert jnp.allclose(out2, ref2, atol=1e-5, rtol=1e-5), "case 2 mismatch vs reference"

    print("KERNEL_OK")
</pallas_src>

<mosaic_0001>
module attributes {stable_mosaic.version = 11 : i64} {
  func.func @_pool_kernel(%arg0: i32, %arg1: i32, %arg2: memref<1x64x128xf32, #tpu.memory_space<vmem>>, %arg3: memref<1x64x1xf32, #tpu.memory_space<vmem>>) attributes {dimension_semantics = [#tpu.dimension_semantics<parallel>, #tpu.dimension_semantics<arbitrary>], iteration_bounds = array<i64: 2, 1>, scalar_prefetch = 0 : i64, scratch_operands = 0 : i64, tpu.core_type = #tpu.core_type<tc>, window_params = [{transform_indices = @transform_0, window_bounds = array<i64: 1, 64, 128>}, {transform_indices = @transform_1, window_bounds = array<i64: 1, 64, 1>}]} {
    %c0_i32 = arith.constant 0 : i32
    %0 = arith.cmpi eq, %arg1, %c0_i32 : i32
    %1 = arith.extui %0 : i1 to i32
    %c0_i32_0 = arith.constant 0 : i32
    %2 = arith.cmpi ne, %1, %c0_i32_0 : i32
    scf.if %2 {
      %cst_10 = arith.constant 0.000000e+00 : f32
      %13 = vector.broadcast %cst_10 : f32 to vector<1x64x1xf32>
      %c0_11 = arith.constant 0 : index
      %c0_12 = arith.constant 0 : index
      %c0_13 = arith.constant 0 : index
      %14 = vector.load %arg3[%c0_11, %c0_12, %c0_13] : memref<1x64x1xf32, #tpu.memory_space<vmem>>, vector<1x64x1xf32>
      tpu.vector_store %arg3[%c0_11, %c0_12, %c0_13], %13 {strides = array<i32>} : memref<1x64x1xf32, #tpu.memory_space<vmem>>, vector<1x64x1xf32>,
    } else {
    }
    %c0 = arith.constant 0 : index
    %c0_1 = arith.constant 0 : index
    %c0_2 = arith.constant 0 : index
    %3 = vector.load %arg2[%c0, %c0_1, %c0_2] : memref<1x64x128xf32, #tpu.memory_space<vmem>>, vector<1x64x128xf32>
    %4 = vector.shape_cast %3 : vector<1x64x128xf32> to vector<64x128xf32>
    %cst = arith.constant 1.000000e+00 : f32
    %5 = vector.broadcast %cst : f32 to vector<128x1xf32>
    %c0_3 = arith.constant 0 : index
    %c0_4 = arith.constant 0 : index
    %c0_5 = arith.constant 0 : index
    %6 = vector.load %arg3[%c0_3, %c0_4, %c0_5] : memref<1x64x1xf32, #tpu.memory_space<vmem>>, vector<1x64x1xf32>
    %7 = vector.shape_cast %6 : vector<1x64x1xf32> to vector<64x1xf32>
    %cst_6 = arith.constant dense<0.000000e+00> : vector<64x1xf32>
    %8 = tpu.matmul %4, %5, %cst_6 {dimension_numbers = #tpu.dot_dimension_numbers<[1], [0], [0], [1], [0, 0, 1, 1], [], []>} : vector<64x128xf32>, vector<128x1xf32>, vector<64x1xf32> -> vector<64x1xf32>
    %9 = arith.addf %7, %8 : vector<64x1xf32>
    %c0_7 = arith.constant 0 : index
    %c0_8 = arith.constant 0 : index
    %c0_9 = arith.constant 0 : index
    %10 = vector.load %arg3[%c0_7, %c0_8, %c0_9] : memref<1x64x1xf32, #tpu.memory_space<vmem>>, vector<1x64x1xf32>
    %11 = vector.shape_cast %10 : vector<1x64x1xf32> to vector<64x1xf32>
    %12 = vector.shape_cast %9 : vector<64x1xf32> to vector<1x64x1xf32>
    tpu.vector_store %arg3[%c0_7, %c0_8, %c0_9], %12 {strides = array<i32>} : memref<1x64x1xf32, #tpu.memory_space<vmem>>, vector<1x64x1xf32>,
    return
  }
  func.func @transform_0(%arg0: i32, %arg1: i32) -> (i32, i32, i32) {
    %c0_i32 = arith.constant 0 : i32
    %c0_i32_0 = arith.constant 0 : i32
    return %arg0, %c0_i32, %arg1 : i32, i32, i32
  }
  func.func @transform_1(%arg0: i32, %arg1: i32) -> (i32, i32, i32) {
    %c0_i32 = arith.constant 0 : i32
    %c0_i32_0 = arith.constant 0 : i32
    %c0_i32_1 = arith.constant 0 : i32
    return %arg0, %c0_i32, %c0_i32_0 : i32, i32, i32
  }
}

</mosaic_0001>

<bundles_post_ra>
// kernel: tpu_custom_call.1
= control target key start
LH: loop header
LB: loop body
LE: loop exit
PB: predicated region body
PF: predicated region fallthrough
CT: control target
= control target key end

     0   :  { %6 = vsyncpa [#allocation3], 0  ;;  %s861_s0 = inlined_call_operand.hbm [shape: f32[2,64,128], index: 0, kind: input, shape index: {}]   ;;  %s862_s1 = inlined_call_operand.vmem [shape: f32[2,64,1], index: 1, kind: output, shape index: {}]  }
   0x1   :  { %8 = vsyncpa [#allocation3 + $0x1], 0  ;;  %s649_s6 = smov 0   ;;  %s651_s7 = smov 0  }
   0x2   :  { %s653_s8 = smov 0   ;;  %s655_s9 = smov 0  }
   0x3   :  { %s657_s10 = smov 0   ;;  %s659_s11 = smov 0  }
   0x4 LB: > { %s380_s12 = sadd.s32 4294967295, %s632_s11   ;;  %s26_s13 = sadd.s32 1, %s628_s10  ;;  %s632_s11 = sphi %s659_s11, %s14_s11   ;;  %s628_s10 = sphi %s657_s10, %s870_s10   ;;  %s624_s9 = sphi %s655_s9, %s869_s9   ;;  %s620_s8 = sphi %s653_s8, %s868_s8   ;;  %s616_s7 = sphi %s651_s7, %s867_s7   ;;  %s612_s6 = sphi %s649_s6, %s866_s6  }
   0x5   : > { %p28_p0 = scmp.ge.s32.totalorder %s26_s13, 2  ;;  %s35_s14 = sadd.s32 1, %s620_s8 }
   0x6   : > { %p42_p1 = scmp.ne.s32.totalorder %s620_s8, %s616_s7  ;;  %p43_p2 = scmp.eq.s32.totalorder %s632_s11, 0 }
   0x7   : > { %s872_s13 = smov (%p28_p0, %s26_s13), 0  ;;  %p48_p4 = scmp.ne.s32.totalorder %s616_s7, %s612_s6 }
   0x8   : > { %p685_p3 = por %p43_p2, %p42_p1  ;;  %s30_s16 = ssub.s32 %s628_s10, %s872_s13 }
   0x9   : > { %p49_p5 = scmp.eq.s32.totalorder %s380_s12, 0  ;;  %p33_p6 = scmp.eq.s32.totalorder %s30_s16, 0 }
   0xa   : > { %p501_p8 = scmp.lt.s32.totalorder %s632_s11, 2  ;;  %s98_s19 = sand.u32 1, %s620_s8  }
   0xb   : > { %p692_p7 = por %p49_p5, %p48_p4  ;;  %s393_s20 = sshll.u32 %s628_s10, 10 }
   0xc   : > { %s698_s18 = scalar_select %p33_p6, %s620_s8, %s35_s14  }
   0xd   : > { %s384_s21 = sshll.u32 %s98_s19, 6  ;;  %s109_s24 = scalar_lea.hbm %s861_s0, %s393_s20 }
   0xe   : > { %s102_s25 = scalar_lea.vmem [#allocation2], %s384_s21  ;;  %p707_p9 = pnand %p501_p8, %p685_p3 }
   0xf   : > { %s110_s26 = sshll.u32 %s102_s25, 4  ;;  %s99_s28 = scalar_lea.sflag [#allocation3], %s98_s19  ;;  %s111_s26 = int_to_ptr.vmem [resolvable:$true] %s110_s26 }
  0x10   : > { %p556_p10 = pneg %p707_p9  ;;  %s567_s29 = scalar_lea.vmem %s111_s26, 1024 }
  0x11   : > { %p568_p11 = scmp.ne.s32.totalorder %s111_s26, %s567_s29  ;;  %s634_s30 = smov [#allocation2]  }
  0x12   : > { %s572_s2 = sshll.u32 %s634_s30, 4  ;;  %s573_s2 = int_to_ptr.vmem [resolvable:$false] %s572_s2 }
  0x13   : > { %p570_p12 = pnand %p568_p11, %p556_p10  ;;  %s574_s3 = scalar_lea.vmem %s573_s2, 2048 }
  0x14   : > { %p575_p0 = scmp.lt.s32.totalorder %s111_s26, %s573_s2  ;;  %p576_p1 = scmp.lt.s32.totalorder %s574_s3, %s567_s29 }
  0x15   : > { %p571_p13 = pneg %p570_p12 }
  0x16   : > { %p577_p2 = por %p576_p1, %p575_p0 }
  0x18   : > { %p578_p3 = pnand %p577_p2, %p571_p13 }
  0x1a   : > { %581 = shalt.err (!%p578_p3)
}
  0x1b   : > { %s635_s4 = smov 128   ;;  %s636_s5 = smov 8  }
  0x1c   : > { %500 = dma.hbm_to_vmem [thread:$0]  (!%p707_p9), %s109_s24, 1024, %s111_s26, %s99_s28, %s635_s4, %s635_s4, %s636_s5  }
  0x1d   : > { %p387_p4 = scmp.ge.s32.totalorder %s632_s11, 1  ;;  %p118_p5 = scmp.lt.s32.totalorder %s632_s11, 3 }
  0x1f   : > { %p119_p6 = pnand %p387_p4, %p118_p5 }
  0x20   : > { %s124_s6 = sand.u32 (!%p119_p6), 1, %s616_s7  }
  0x21   : > { %122 = sbr.rel (%p119_p6) target bundleno = 275 (0x113), region = 24  ;;  %s388_s12 = sshll.u32 (!%p119_p6), %s124_s6, 6 }
  0x22   : > { %s125_s14 = scalar_lea.sflag (!%p119_p6), [#allocation3], %s124_s6  ;;  %s718_s15 = scalar_lea.vmem (!%p119_p6), [#allocation2], %s388_s12 }
  0x26   : > { %607 = dma.done.wait (%p692_p7), %s125_s14, 1024  }
  0x27   : > { %609 = vsyncadd (%p692_p7), %s125_s14, 4294966272  ;;  %p147_p8 = scmp.lt.s32.totalorder %s624_s9, 1  ;;  %v637_v0 = vmov 1.0   ;;  %vm156_vm0 = vcmask 7168   ;;  %v638_v1 = vmov 0.0   ;;  %v165_v2 = vld [vmem:[%s718_s15] sm:$0xff] }
  0x28   : > { %419 = vmatprep.subr.mxu0 %v637_v0  ;;  %463 = vmatprep.subr.mxu1 %v637_v0  ;;  %v169_v3 = vld [vmem:[%s718_s15 + $0x20] sm:$0xff]  ;;  %v166_v4 = vld [vmem:[%s718_s15 + $0x8] sm:$0xff]  ;;  %v167_v6 = vld [vmem:[%s718_s15 + $0x10] sm:$0xff] }
  0x29   : > { %420 = vmatpush3.msra.mxu0 %v637_v0  ;;  %479 = vmatpush3.msra.mxu1 %v637_v0  ;;  %s874_s9 = smov (!%p147_p8, %s624_s9), 1  ;;  %v170_v5 = vld [vmem:[%s718_s15 + $0x28] sm:$0xff]  ;;  %v171_v7 = vld [vmem:[%s718_s15 + $0x30] sm:$0xff]  ;;  %v168_v8 = vld [vmem:[%s718_s15 + $0x18] sm:$0xff] }
  0x2a   : > { %421 = vmatprep.subr.mxu0 %v637_v0  ;;  %464 = vmatprep.subr.mxu1 %v637_v0  ;;  %s394_s16 = sshll.u32 %s874_s9, 6  ;;  %v172_v9 = vld [vmem:[%s718_s15 + $0x38] sm:$0xff] }
  0x2b   : > { %422 = vmatpush3.msra.mxu0 %v637_v0  ;;  %480 = vmatpush3.msra.mxu1 %v637_v0  ;;  %s739_s20 = scalar_lea.vmem %s862_s1, %s394_s16 }
  0x2c   : > { %423 = vmatprep.subr.mxu0 %v637_v0  ;;  %465 = vmatprep.subr.mxu1 %v637_v0  ;;  %158 = vst.msk [vmem:[%s739_s20 + $0x8] sm:$0xff] %vm156_vm0, %v638_v1  ;;  %157 = vst.msk [vmem:[%s739_s20] sm:$0xff] %vm156_vm0, %v638_v1 }
  0x2d   : > { %424 = vmatpush3.msra.mxu0 %v637_v0  ;;  %481 = vmatpush3.msra.mxu1 %v637_v0  ;;  %159 = vst.msk [vmem:[%s739_s20 + $0x10] sm:$0xff] %vm156_vm0, %v638_v1  ;;  %160 = vst.msk [vmem:[%s739_s20 + $0x18] sm:$0xff] %vm156_vm0, %v638_v1 }
  0x2e   : > { %161 = vst.msk [vmem:[%s739_s20 + $0x20] sm:$0xff] %vm156_vm0, %v638_v1  ;;  %162 = vst.msk [vmem:[%s739_s20 + $0x28] sm:$0xff] %vm156_vm0, %v638_v1  ;;  %425 = vmatprep.subr.mxu0 %v637_v0  ;;  %466 = vmatprep.subr.mxu1 %v637_v0 }
  0x2f   : > { %163 = vst.msk [vmem:[%s739_s20 + $0x30] sm:$0xff] %vm156_vm0, %v638_v1  ;;  %164 = vst.msk [vmem:[%s739_s20 + $0x38] sm:$0xff] %vm156_vm0, %v638_v1  ;;  %426 = vmatpush3.msra.mxu0 %v637_v0  ;;  %482 = vmatpush3.msra.mxu1 %v637_v0 }
  0x30   : > { %427 = vmatprep.subr.mxu0 %v637_v0  ;;  %467 = vmatprep.subr.mxu1 %v637_v0 }
  0x31   : > { %428 = vmatpush3.msra.mxu0 %v637_v0  ;;  %483 = vmatpush3.msra.mxu1 %v637_v0 }
  0x32   : > { %429 = vmatprep.subr.mxu0 %v637_v0  ;;  %468 = vmatprep.subr.mxu1 %v637_v0 }
  0x33   : > { %430 = vmatpush3.msra.mxu0 %v637_v0  ;;  %484 = vmatpush3.msra.mxu1 %v637_v0  ;;  %v174_v10 = vld [vmem:[%s739_s20 + $0x8] sm:$0xff]  ;;  %v173_v14 = vld [vmem:[%s739_s20] sm:$0xff] }
  0x34   : > { %431 = vmatprep.subr.mxu0 %v637_v0  ;;  %469 = vmatprep.subr.mxu1 %v637_v0  ;;  %v176_v20 = vld [vmem:[%s739_s20 + $0x18] sm:$0xff]  ;;  %v175_v26 = vld [vmem:[%s739_s20 + $0x10] sm:$0xff] }
  0x35   : > { %432 = vmatpush3.msra.mxu0 %v637_v0  ;;  %485 = vmatpush3.msra.mxu1 %v637_v0  ;;  %v178_v11 = vld [vmem:[%s739_s20 + $0x28] sm:$0xff]  ;;  %v177_v15 = vld [vmem:[%s739_s20 + $0x20] sm:$0xff] }
  0x36   : > { %433 = vmatprep.subr.mxu0 %v637_v0  ;;  %470 = vmatprep.subr.mxu1 %v637_v0  ;;  %v180_v21 = vld [vmem:[%s739_s20 + $0x38] sm:$0xff]  ;;  %v179_v27 = vld [vmem:[%s739_s20 + $0x30] sm:$0xff] }
  0x37   : > { %434 = vmatpush3.msra.mxu0 %v637_v0  ;;  %486 = vmatpush3.msra.mxu1 %v637_v0 }
  0x38   : > { %435 = vmatprep.subr.mxu0 %v637_v0  ;;  %471 = vmatprep.subr.mxu1 %v637_v0 }
  0x39   : > { %436 = vmatpush3.msra.mxu0 %v637_v0  ;;  %487 = vmatpush3.msra.mxu1 %v637_v0 }
  0x3a   : > { %437 = vmatprep.subr.mxu0 %v637_v0  ;;  %472 = vmatprep.subr.mxu1 %v637_v0 }
  0x3b   : > { %438 = vmatpush3.msra.mxu0 %v637_v0  ;;  %488 = vmatpush3.msra.mxu1 %v637_v0 }
  0x3c   : > { %439 = vmatprep.subr.mxu0 %v637_v0  ;;  %473 = vmatprep.subr.mxu1 %v637_v0 }
  0x3d   : > { %440 = vmatpush3.msra.mxu0 %v637_v0  ;;  %489 = vmatpush3.msra.mxu1 %v637_v0 }
  0x3e   : > { %441 = vmatprep.subr.mxu0 %v637_v0  ;;  %474 = vmatprep.subr.mxu1 %v637_v0 }
  0x3f   : > { %442 = vmatpush3.msra.mxu0 %v637_v0  ;;  %490 = vmatpush3.msra.mxu1 %v637_v0 }
  0x40   : > { %443 = vmatprep.subr.mxu0 %v637_v0  ;;  %475 = vmatprep.subr.mxu1 %v637_v0 }
  0x41   : > { %444 = vmatpush3.msra.mxu0 %v637_v0  ;;  %491 = vmatpush3.msra.mxu1 %v637_v0 }
  0x42   : > { %445 = vmatprep.subr.mxu0 %v637_v0  ;;  %476 = vmatprep.subr.mxu1 %v637_v0 }
  0x43   : > { %446 = vmatpush3.msra.mxu0 %v637_v0  ;;  %492 = vmatpush3.msra.mxu1 %v637_v0 }
  0x44   : > { %447 = vmatprep.subr.mxu0 %v637_v0  ;;  %477 = vmatprep.subr.mxu1 %v637_v0 }
  0x45   : > { %448 = vmatpush3.msra.mxu0 %v637_v0  ;;  %493 = vmatpush3.msra.mxu1 %v637_v0 }
  0x46   : > { %449 = vmatprep.subr.mxu0 %v637_v0  ;;  %478 = vmatprep.subr.mxu1 %v637_v0 }
  0x47   : > { %450 = vmatpush3.msra.mxu0 %v637_v0  ;;  %494 = vmatpush3.msra.mxu1 %v637_v0 }
  0x48   : > { %451 = vmatprep.mubr.f32.mxu0 %v165_v2  ;;  %457 = vmatprep.mubr.f32.mxu1 %v169_v3 }
  0x49   : > { %452 = vmatmul.mubr.f32.vlgmr.msra.gmra.mxu0 %v166_v4  ;;  %458 = vmatmul.mubr.f32.vlgmr.msra.gmra.mxu1 %v170_v5 }
  0x4a   : > { %454 = vmatprep.mubr.f32.mxu0 %v167_v6  ;;  %460 = vmatprep.mubr.f32.mxu1 %v171_v7 }
  0x4d   : > { %455 = vmatmul.mubr.f32.gmra.mxu0 %v168_v8  ;;  %461 = vmatmul.mubr.f32.gmra.mxu1 %v172_v9 }
 0x109   : > { %v453_v12 = vpop.f32.mrf.mxu0  ;;  %v459_v13 = vpop.f32.mrf.mxu1 }
 0x10a   : > { %v287_v16 = vadd.f32 %v453_v12, %v174_v10  ;;  %v291_v17 = vadd.f32 %v459_v13, %v178_v11 }
 0x10b   : > { %v247_v18 = vpop.f32.mrf.mxu0  ;;  %v267_v19 = vpop.f32.mrf.mxu1 }
 0x10c   : > { %296 = vst.msk [vmem:[%s739_s20 + $0x8] sm:$0xff] %vm156_vm0, %v287_v16  ;;  %300 = vst.msk [vmem:[%s739_s20 + $0x28] sm:$0xff] %vm156_vm0, %v291_v17  ;;  %v286_v22 = vadd.f32 %v247_v18, %v173_v14  ;;  %v290_v23 = vadd.f32 %v267_v19, %v177_v15 }
 0x10d   : > { %v456_v24 = vpop.f32.mrf.mxu0  ;;  %v462_v25 = vpop.f32.mrf.mxu1 }
 0x10e   : > { %295 = vst.msk [vmem:[%s739_s20] sm:$0xff] %vm156_vm0, %v286_v22  ;;  %299 = vst.msk [vmem:[%s739_s20 + $0x20] sm:$0xff] %vm156_vm0, %v290_v23  ;;  %v289_v28 = vadd.f32 %v456_v24, %v176_v20  ;;  %v293_v29 = vadd.f32 %v462_v25, %v180_v21 }
 0x10f   : > { %v257_v30 = vpop.f32.mrf.mxu0  ;;  %v277_v31 = vpop.f32.mrf.mxu1 }
 0x110   : > { %298 = vst.msk [vmem:[%s739_s20 + $0x18] sm:$0xff] %vm156_vm0, %v289_v28  ;;  %302 = vst.msk [vmem:[%s739_s20 + $0x38] sm:$0xff] %vm156_vm0, %v293_v29  ;;  %v288_v32 = vadd.f32 %v257_v30, %v175_v26  ;;  %v292_v33 = vadd.f32 %v277_v31, %v179_v27 }
 0x112   : > { %297 = vst.msk [vmem:[%s739_s20 + $0x10] sm:$0xff] %vm156_vm0, %v288_v32  ;;  %301 = vst.msk [vmem:[%s739_s20 + $0x30] sm:$0xff] %vm156_vm0, %v292_v33 }
 0x113 PF: > { %s14_s11 = sadd.s32 1, %s632_s11   ;;  %s866_s6 = smov %s616_s7 }
 0x114   : > { %p11_p7 = scmp.ge.s32.totalorder %s14_s11, 4   ;;  %s867_s7 = smov %s620_s8 }
 0x115   : > { %s868_s8 = smov %s698_s18  ;;  %s869_s9 = smov %s628_s10 }
 0x116   : > { %s870_s10 = smov %s872_s13  ;;  %13 = sbr.rel (!%p11_p7) target bundleno = 4 (0x4), region = 68 }
 0x11b   :  { %324 = vsyncpa [#allocation3], 1 }
 0x11c   :  { %326 = vsyncpa [#allocation3 + $0x1], 1 }

</bundles_post_ra>
